<compile_context>
chip_gen: v5e
topology: v5e:2x2
jax: 0.10.0
libtpu: 0.0.40
codegen_flags: <defaults>
</compile_context>

<pallas_src>
import functools

import jax
import jax.numpy as jnp
from jax import lax
from jax.experimental import pallas as pl
from jax.experimental.pallas import tpu as pltpu

BLOCK_SIZE = 64     # causal-mask buffer size in the PyTorch module
N_EMBD = 126        # C
DROPOUT = 0.2       # identity at inference


def _head_kernel(x_ref, wqkv_ref, o_ref, *, scale, head_size, head_pad):
    # x_ref:    (Bb, T, Cp)   block of Bb batch elements, embedding padded to Cp
    # wqkv_ref: (Cp, 3*Hp)    fused [Wq | Wk | Wv], each padded to its own 128-lane tile
    # o_ref:    (Bb, T*H)     lane-dense output slab
    Bb, T, Cp = x_ref.shape
    H, Hp = head_size, head_pad

    x = x_ref[...]
    w = wqkv_ref[...]

    # Fused projection: one large-M MXU matmul (M = Bb*T, N = 3*Hp), f32 accumulation.
    qkv = jnp.dot(x.reshape(Bb * T, Cp), w,
                  preferred_element_type=jnp.float32)              # (Bb*T, 3*Hp)
    qkv = qkv.reshape(Bb, T, 3 * Hp)

    # 128-lane tile-aligned slices (offsets 0, Hp, 2*Hp); columns H..Hp are zero.
    q = qkv[:, :, 0 * Hp:1 * Hp]
    k = qkv[:, :, 1 * Hp:2 * Hp]
    v = qkv[:, :, 2 * Hp:3 * Hp]

    # Attention scores, scaled by C**-0.5 (the module scales by the embedding
    # dim, not head_size).  Contraction over the zero-padded head dim is exact.
    wei = jnp.einsum('bqd,bkd->bqk', q, k,
                     preferred_element_type=jnp.float32) * scale   # (Bb, T, T)

    # Causal mask (tril): query position j attends only to keys j' <= j.
    row = lax.broadcasted_iota(jnp.int32, (T, T), 0)
    col = lax.broadcasted_iota(jnp.int32, (T, T), 1)
    wei = jnp.where((col <= row)[None, :, :], wei, -jnp.inf)

    # Numerically stable softmax.  Exact divide for parity with the f32 PyTorch
    # reference (pl.reciprocal(denom, approx=True) would use the free EUP slot
    # but adds ~1e-3-level error).
    m = jnp.max(wei, axis=-1, keepdims=True)
    p = jnp.exp(wei - m)
    wei = p / jnp.sum(p, axis=-1, keepdims=True)

    # Dropout(p=0.2) on `wei` is identity in eval mode.
    # TODO(synk): training-mode dropout would need pltpu.prng_seed / prng_random_bits.

    out = jnp.einsum('bqk,bkd->bqd', wei, v,
                     preferred_element_type=jnp.float32)           # (Bb, T, Hp)

    # Lane-dense store: drop the zero pad columns and collapse (T, H) into one
    # T*H-wide row per batch element (multiple of 128 lanes -> unmasked vst).
    o_ref[...] = out[:, :, :H].reshape(Bb, T * H).astype(o_ref.dtype)


def _block_working_set_bytes(bb, T, c_pad, hp, h, in_bytes):
    rows = bb * T
    x_tile = 2 * rows * c_pad * in_bytes       # double-buffered x block
    w_tile = 2 * c_pad * 3 * hp * in_bytes     # fused weight (constant, tiny)
    qkv = rows * 3 * hp * 4                    # f32 projection output
    wei = 2 * bb * T * T * 4                   # scores + softmax temp (f32)
    out_pad = rows * hp * 4                    # padded attention output (f32)
    out_tile = 2 * rows * h * 4                # double-buffered lane-dense output
    return x_tile + w_tile + qkv + wei + out_pad + out_tile


def _choose_block_b(B, T, c_pad, hp, h, in_bytes, *,
                    target_rows=1024, vmem_budget_bytes=20 << 20):
    """Largest batch block whose working set fits the VMEM budget.

    target_rows ~1024 keeps Bb*T a multiple of the MXU M tile (128 on v5e,
    256 on v6e/v7x) for full batches and amortizes the ~0.35us per-step
    pipeline overhead.  The 20 MiB budget (under the 32 MiB scoped limit set
    below) is safe on v5e/v6e (128 MiB VMEM) and on v7x's 64 MiB per core with
    both cores active via dimension_semantics=("parallel",).
    """
    bb = max(1, min(B, max(1, target_rows // T)))
    while bb > 1 and _block_working_set_bytes(bb, T, c_pad, hp, h, in_bytes) > vmem_budget_bytes:
        bb //= 2
    if bb < B and bb % 8 != 0:
        bb = max(8, (bb // 8) * 8)   # keep the (bb, T*H) output block sublane-friendly
    return bb


def head_forward(x, wq, wk, wv, *, block_b=None, matmul_dtype=None,
                 x_buffer_count=2, vmem_limit_bytes=32 * 1024 * 1024):
    """Single causal attention head. x: (B, T, C); w*: (C, H). Returns (B, T, H)."""
    B, T, C = x.shape
    H = wq.shape[1]
    assert T <= BLOCK_SIZE, "sequence length must be <= block_size"
    out_dtype = x.dtype
    scale = float(C) ** -0.5   # module scales by the (unpadded) embedding dim C

    # Zero-pad the contraction dim C (126 -> 128) and the head dim H (32 -> 128)
    # so every in-kernel slice / matmul operand is (8, 128)-tile aligned.
    c_pad = pl.cdiv(C, 128) * 128
    hp = pl.cdiv(H, 128) * 128

    in_dtype = jnp.dtype(out_dtype if matmul_dtype is None else matmul_dtype)
    in_bytes = in_dtype.itemsize

    def _pad_w(w):
        return jnp.pad(w, ((0, c_pad - C), (0, hp - H)))

    # Fused (Cp, 3*Hp) weight: each projection owns its own 128-lane tile.
    wqkv = jnp.concatenate([_pad_w(wq), _pad_w(wk), _pad_w(wv)], axis=1).astype(in_dtype)
    x_p = jnp.pad(x, ((0, 0), (0, 0), (0, c_pad - C))).astype(in_dtype)

    if block_b is not None:
        bb = max(1, min(block_b, B))
    else:
        bb = _choose_block_b(B, T, c_pad, hp, H, in_bytes)

    b_pad = pl.cdiv(B, bb) * bb
    if b_pad != B:
        # Padded batch rows are all-zero -> zero q/k/v -> uniform softmax over
        # zeros -> zero output.  They are sliced off below and never read.
        x_p = jnp.pad(x_p, ((0, b_pad - B), (0, 0), (0, 0)))

    if x_buffer_count != 2:
        # Deeper input pipelining if the x DMA is still exposed after enlarging bb.
        x_spec = pl.BlockSpec((bb, T, c_pad), lambda b: (b, 0, 0),
                              pipeline_mode=pl.Buffered(x_buffer_count))
    else:
        x_spec = pl.BlockSpec((bb, T, c_pad), lambda b: (b, 0, 0))

    flops = 2 * b_pad * T * c_pad * 3 * hp + 2 * 2 * b_pad * T * T * hp
    transcendentals = b_pad * T * T
    bytes_accessed = (b_pad * T * c_pad * in_bytes
                      + c_pad * 3 * hp * in_bytes
                      + b_pad * T * H * jnp.dtype(out_dtype).itemsize)
    cost = pl.CostEstimate(flops=flops, transcendentals=transcendentals,
                           bytes_accessed=bytes_accessed)

    kernel = functools.partial(_head_kernel, scale=scale, head_size=H, head_pad=hp)

    out = pl.pallas_call(
        kernel,
        out_shape=jax.ShapeDtypeStruct((b_pad, T * H), out_dtype),
        grid_spec=pltpu.PrefetchScalarGridSpec(
            num_scalar_prefetch=0,
            grid=(b_pad // bb,),
            in_specs=[
                x_spec,
                pl.BlockSpec((c_pad, 3 * hp), lambda b: (0, 0)),
            ],
            out_specs=pl.BlockSpec((bb, T * H), lambda b: (b, 0)),
        ),
        compiler_params=pltpu.CompilerParams(
            dimension_semantics=("parallel",),        # megacore-shardable batch axis
            vmem_limit_bytes=vmem_limit_bytes),       # explicit (v5e default is only 16 MiB)
        cost_estimate=cost,
    )(x_p, wqkv)

    return out[:B].reshape(B, T, H)


def reference_forward(x, wq, wk, wv):
    """Pure-JAX reference mirroring the PyTorch module (eval mode)."""
    B, T, C = x.shape
    q = x @ wq
    k = x @ wk
    v = x @ wv
    wei = (q @ jnp.swapaxes(k, -1, -2)) * (C ** -0.5)
    tril = jnp.tril(jnp.ones((T, T), dtype=bool))
    wei = jnp.where(tril, wei, -jnp.inf)
    wei = jax.nn.softmax(wei, axis=-1)
    return wei @ v


if __name__ == "__main__":
    key = jax.random.PRNGKey(0)
    k_x, k_q, k_k, k_v = jax.random.split(key, 4)

    B, T, C = 2, 8, N_EMBD
    head_size = 32

    x = jax.random.normal(k_x, (B, T, C), dtype=jnp.float32)
    # nn.Linear(n_embd, head_size, bias=None): weight is (head_size, n_embd),
    # applied as x @ W.T — we store W.T directly as (n_embd, head_size).
    bound = 1.0 / (C ** 0.5)
    wq = jax.random.uniform(k_q, (C, head_size), jnp.float32, -bound, bound)
    wk = jax.random.uniform(k_k, (C, head_size), jnp.float32, -bound, bound)
    wv = jax.random.uniform(k_v, (C, head_size), jnp.float32, -bound, bound)

    ref = reference_forward(x, wq, wk, wv)

    # Default (f32) path: matches the f32 PyTorch module (tolerance only covers
    # matmul reassociation / MXU pass differences).
    out = jax.block_until_ready(head_forward(x, wq, wk, wv))
    assert out.shape == (B, T, head_size)
    assert jnp.allclose(out, ref, atol=5e-3, rtol=5e-3), "f32 mismatch vs reference"

    # bf16 matmul-operand fast path: halves x HBM traffic and doubles MXU
    # throughput on v6e/v7x; small documented deviation from the f32 module.
    out_bf16 = jax.block_until_ready(
        head_forward(x, wq, wk, wv, matmul_dtype=jnp.bfloat16))
    assert out_bf16.shape == (B, T, head_size)
    assert jnp.allclose(out_bf16, ref, atol=2e-2, rtol=2e-2), "bf16 mismatch vs reference"

    print("KERNEL_OK")
</pallas_src>

<mosaic_0001>
module attributes {stable_mosaic.version = 11 : i64} {
  func.func @_head_kernel(%arg0: i32, %arg1: memref<2x8x128xf32, #tpu.memory_space<vmem>>, %arg2: memref<128x384xf32, #tpu.memory_space<vmem>>, %arg3: memref<2x256xf32, #tpu.memory_space<vmem>>) attributes {dimension_semantics = [#tpu.dimension_semantics<parallel>], iteration_bounds = array<i64: 1>, scalar_prefetch = 0 : i64, scratch_operands = 0 : i64, tpu.core_type = #tpu.core_type<tc>, window_params = [{transform_indices = @transform_0, window_bounds = array<i64: 2, 8, 128>}, {pipeline_mode = #tpu.pipeline_mode<synchronous>, transform_indices = @transform_1, window_bounds = array<i64: 128, 384>}, {transform_indices = @transform_2, window_bounds = array<i64: 2, 256>}]} {
    %c0 = arith.constant 0 : index
    %c0_0 = arith.constant 0 : index
    %c0_1 = arith.constant 0 : index
    %0 = vector.load %arg1[%c0, %c0_0, %c0_1] : memref<2x8x128xf32, #tpu.memory_space<vmem>>, vector<2x8x128xf32>
    %c0_2 = arith.constant 0 : index
    %c0_3 = arith.constant 0 : index
    %1 = vector.load %arg2[%c0_2, %c0_3] : memref<128x384xf32, #tpu.memory_space<vmem>>, vector<128x384xf32>
    %2 = vector.shape_cast %0 : vector<2x8x128xf32> to vector<16x128xf32>
    %cst = arith.constant dense<0.000000e+00> : vector<16x384xf32>
    %3 = tpu.matmul %2, %1, %cst {dimension_numbers = #tpu.dot_dimension_numbers<[1], [0], [0], [1], [0, 0, 1, 1], [], []>} : vector<16x128xf32>, vector<128x384xf32>, vector<16x384xf32> -> vector<16x384xf32>
    %4 = vector.shape_cast %3 : vector<16x384xf32> to vector<2x8x384xf32>
    %5 = vector.extract_strided_slice %4 {offsets = [0, 0, 0], sizes = [2, 8, 128], strides = [1, 1, 1]} : vector<2x8x384xf32> to vector<2x8x128xf32>
    %6 = vector.extract_strided_slice %4 {offsets = [0, 0, 128], sizes = [2, 8, 128], strides = [1, 1, 1]} : vector<2x8x384xf32> to vector<2x8x128xf32>
    %7 = vector.extract_strided_slice %4 {offsets = [0, 0, 256], sizes = [2, 8, 128], strides = [1, 1, 1]} : vector<2x8x384xf32> to vector<2x8x128xf32>
    "tpu.trace_start"() <{level = 10 : i32, message = "bqd,bkd->bqk"}> : () -> ()
    %cst_4 = arith.constant dense<0.000000e+00> : vector<2x8x8xf32>
    %8 = tpu.matmul %5, %6, %cst_4 {dimension_numbers = #tpu.dot_dimension_numbers<[2], [2], [1], [1], [0, 0, 0, 1, 1, 1], [0], [0]>} : vector<2x8x128xf32>, vector<2x8x128xf32>, vector<2x8x8xf32> -> vector<2x8x8xf32>
    "tpu.trace_stop"() : () -> ()
    %cst_5 = arith.constant 0.0890870839 : f32
    %9 = vector.broadcast %cst_5 : f32 to vector<2x8x8xf32>
    %10 = arith.mulf %8, %9 : vector<2x8x8xf32>
    %11 = tpu.iota {dimensions = array<i32: 0>} : vector<8x8xi32>
    %12 = tpu.iota {dimensions = array<i32: 1>} : vector<8x8xi32>
    %13 = arith.cmpi sle, %12, %11 : vector<8x8xi32>
    %14 = vector.shape_cast %13 : vector<8x8xi1> to vector<1x8x8xi1>
    %cst_6 = arith.constant 0xFF800000 : f32
    %15 = vector.shape_cast %14 : vector<1x8x8xi1> to vector<1x8x8xi1>
    %16 = vector.broadcast %15 : vector<1x8x8xi1> to vector<2x8x8xi1>
    %17 = vector.broadcast %cst_6 : f32 to vector<2x8x8xf32>
    %18 = arith.select %16, %10, %17 : vector<2x8x8xi1>, vector<2x8x8xf32>
    %cst_7 = arith.constant dense<0xFF800000> : vector<2x8xf32>
    %19 = vector.multi_reduction <maximumf>, %18, %cst_7 [2] : vector<2x8x8xf32> to vector<2x8xf32>
    %20 = vector.shape_cast %19 : vector<2x8xf32> to vector<2x8x1xf32>
    %21 = vector.broadcast %20 : vector<2x8x1xf32> to vector<2x8x8xf32>
    %22 = arith.subf %18, %21 : vector<2x8x8xf32>
    %23 = math.exp %22 : vector<2x8x8xf32>
    %cst_8 = arith.constant dense<0.000000e+00> : vector<2x8xf32>
    %24 = vector.multi_reduction <add>, %23, %cst_8 [2] : vector<2x8x8xf32> to vector<2x8xf32>
    %25 = vector.shape_cast %24 : vector<2x8xf32> to vector<2x8x1xf32>
    %26 = vector.broadcast %25 : vector<2x8x1xf32> to vector<2x8x8xf32>
    %27 = arith.divf %23, %26 : vector<2x8x8xf32>
    "tpu.trace_start"() <{level = 10 : i32, message = "bqk,bkd->bqd"}> : () -> ()
    %cst_9 = arith.constant dense<0.000000e+00> : vector<2x8x128xf32>
    %28 = tpu.matmul %27, %7, %cst_9 {dimension_numbers = #tpu.dot_dimension_numbers<[2], [1], [1], [2], [0, 0, 0, 1, 1, 2], [0], [0]>} : vector<2x8x8xf32>, vector<2x8x128xf32>, vector<2x8x128xf32> -> vector<2x8x128xf32>
    "tpu.trace_stop"() : () -> ()
    %29 = vector.extract_strided_slice %28 {offsets = [0, 0, 0], sizes = [2, 8, 32], strides = [1, 1, 1]} : vector<2x8x128xf32> to vector<2x8x32xf32>
    %30 = vector.shape_cast %29 : vector<2x8x32xf32> to vector<2x256xf32>
    %c0_10 = arith.constant 0 : index
    %c0_11 = arith.constant 0 : index
    %31 = vector.load %arg3[%c0_10, %c0_11] : memref<2x256xf32, #tpu.memory_space<vmem>>, vector<2x256xf32>
    tpu.vector_store %arg3[%c0_10, %c0_11], %30 {strides = array<i32>} : memref<2x256xf32, #tpu.memory_space<vmem>>, vector<2x256xf32>,
    return
  }
  func.func @transform_0(%arg0: i32) -> (i32, i32, i32) {
    %c0_i32 = arith.constant 0 : i32
    %c0_i32_0 = arith.constant 0 : i32
    %c0_i32_1 = arith.constant 0 : i32
    return %arg0, %c0_i32, %c0_i32_0 : i32, i32, i32
  }
  func.func @transform_1(%arg0: i32) -> (i32, i32) {
    %c0_i32 = arith.constant 0 : i32
    %c0_i32_0 = arith.constant 0 : i32
    %c0_i32_1 = arith.constant 0 : i32
    return %c0_i32, %c0_i32_0 : i32, i32
  }
  func.func @transform_2(%arg0: i32) -> (i32, i32) {
    %c0_i32 = arith.constant 0 : i32
    %c0_i32_0 = arith.constant 0 : i32
    return %arg0, %c0_i32 : i32, i32
  }
}

</mosaic_0001>

<bundles_post_ra>
// kernel: tpu_custom_call.1
= control target key start
LH: loop header
LB: loop body
LE: loop exit
PB: predicated region body
PF: predicated region fallthrough
CT: control target
= control target key end

     0   :  { %7 = vsyncpa [#allocation3], 0  ;;  %s572_s0 = inlined_call_operand.hbm [shape: f32[2,8,128], index: 0, kind: input, shape index: {}]   ;;  %s573_s1 = inlined_call_operand.hbm [shape: f32[128,384], index: 1, kind: input, shape index: {}]   ;;  %s574_s2 = inlined_call_operand.hbm [shape: f32[2,256], index: 2, kind: output, shape index: {}]  }
   0x1   :  { %8 = vsyncpa [#allocation6], 0 }
   0x2   :  { %9 = vsyncpa [#allocation4], 0  ;;  %s14_s11 = sshll.u32 %s572_s0, 4  ;;  %s520_s12 = smov [#allocation2]   ;;  %s15_s11 = int_to_ptr.hbm [resolvable:$true] %s14_s11 }
   0x3   :  { %s16_s13 = sshll.u32 %s520_s12, 4  ;;  %s27_s16 = sshll.u32 %s573_s1, 4  ;;  %s17_s13 = int_to_ptr.vmem [resolvable:$true] %s16_s13  ;;  %s28_s16 = int_to_ptr.hbm [resolvable:$true] %s27_s16 }
   0x4   :  { %s521_s17 = smov 128   ;;  %s522_s18 = smov 8  }
   0x5   :  { %22 = dma.hbm_to_vmem [thread:$0]  %s15_s11, 256, %s17_s13, [#allocation3], %s521_s17, %s521_s17, %s522_s18  }
   0x6   :  { %s523_s19 = smov [#allocation5]   ;;  %s524_s21 = smov 384  }
   0x7   :  { %s29_s20 = sshll.u32 %s523_s19, 4  ;;  %s525_s22 = smov 24   ;;  %s30_s20 = int_to_ptr.vmem [resolvable:$true] %s29_s20 }
   0x8   :  { %35 = dma.hbm_to_vmem [thread:$0]  %s28_s16, 6144, %s30_s20, [#allocation6], %s524_s21, %s524_s21, %s525_s22  }
   0x9   :  { %514 = dma.done.wait [#allocation3], 256  }
   0xa   :  { %515 = vsyncadd [#allocation3], 4294967040 }
   0xb   :  { %516 = dma.done.wait [#allocation6], 6144  }
   0xc   :  { %517 = vsyncadd [#allocation6], 4294961152  ;;  %v92_v0 = vld [vmem:[#allocation5 + $0x170] sm:$0xff]  ;;  %v89_v1 = vld [vmem:[#allocation5 + $0x158] sm:$0xff]  ;;  %v205_v45 = vlaneseq  ;;  %vm214_vm1 = vcmask 64512   ;;  %vm310_vm10 = vcmask 1047556  }
   0xd   :  { %v91_v2 = vld [vmem:[#allocation5 + $0x168] sm:$0xff]  ;;  %117 = vmatpush.msra.mxu1 %v92_v0  ;;  %v88_v3 = vld [vmem:[#allocation5 + $0x150] sm:$0xff]  ;;  %v86_v4 = vld [vmem:[#allocation5 + $0x140] sm:$0xff]  ;;  %s528_s0 = smov 64   ;;  %s529_s1 = smov 32   ;;  %vm386_vm11 = vcmask 261120  }
   0xe   :  { %94 = vmatpush.msra.mxu0 %v91_v2  ;;  %v85_v5 = vld [vmem:[#allocation5 + $0x138] sm:$0xff]  ;;  %v83_v6 = vld [vmem:[#allocation5 + $0x128] sm:$0xff]  ;;  %v82_v7 = vld [vmem:[#allocation5 + $0x120] sm:$0xff]  ;;  %v206_v48 = vshrl.u32 %v205_v45, 7  ;;  %v208_v49 = vand.u32 127, %v205_v45  ;;  %s530_s23 = smov 96  }
   0xf   :  { %118 = vmatpush.msra.mxu1 %v89_v1  ;;  %v80_v8 = vld [vmem:[#allocation5 + $0x110] sm:$0xff]  ;;  %v79_v9 = vld [vmem:[#allocation5 + $0x108] sm:$0xff]  ;;  %v77_v10 = vld [vmem:[#allocation5 + $0xf8] sm:$0xff]  ;;  %v527_v45 = vmov 1934713408   ;;  %vm388_vm12 = vcmask 523264  }
  0x10   :  { %95 = vmatpush.msra.mxu0 %v88_v3  ;;  %v76_v11 = vld [vmem:[#allocation5 + $0xf0] sm:$0xff]  ;;  %v74_v12 = vld [vmem:[#allocation5 + $0xe0] sm:$0xff]  ;;  %v73_v13 = vld [vmem:[#allocation5 + $0xd8] sm:$0xff]  ;;  %vm209_vm0 = vcmp.le.s32.totalorder %v208_v49, %v206_v48  ;;  %vm390_vm13 = vcmask 785408   ;;  %s531_s24 = smov [#allocation7]   ;;  %s409_s28 = sshll.u32 %s574_s2, 4  ;;  %s410_s28 = int_to_ptr.hbm [resolvable:$true] %s409_s28 }
  0x11   :  { %119 = vmatpush.msra.mxu1 %v86_v4  ;;  %v71_v14 = vld [vmem:[#allocation5 + $0xc8] sm:$0xff]  ;;  %v70_v15 = vld [vmem:[#allocation5 + $0xc0] sm:$0xff]  ;;  %v68_v16 = vld [vmem:[#allocation5 + $0xb0] sm:$0xff]  ;;  %s407_s25 = sshll.u32 %s531_s24, 4  ;;  %vm398_vm14 = vcmask 1041408   ;;  %s408_s25 = int_to_ptr.vmem [resolvable:$true] %s407_s25 }
  0x12   :  { %96 = vmatpush.msra.mxu0 %v85_v5  ;;  %v67_v17 = vld [vmem:[#allocation5 + $0xa8] sm:$0xff]  ;;  %v65_v18 = vld [vmem:[#allocation5 + $0x98] sm:$0xff]  ;;  %v64_v19 = vld [vmem:[#allocation5 + $0x90] sm:$0xff] }
  0x13   :  { %120 = vmatpush.msra.mxu1 %v83_v6  ;;  %v62_v20 = vld [vmem:[#allocation5 + $0x80] sm:$0xff]  ;;  %v61_v21 = vld [vmem:[#allocation5 + $0x78] sm:$0xff]  ;;  %v59_v22 = vld [vmem:[#allocation5 + $0x68] sm:$0xff] }
  0x14   :  { %97 = vmatpush.msra.mxu0 %v82_v7  ;;  %v58_v23 = vld [vmem:[#allocation5 + $0x60] sm:$0xff]  ;;  %v56_v24 = vld [vmem:[#allocation5 + $0x50] sm:$0xff]  ;;  %v55_v25 = vld [vmem:[#allocation5 + $0x48] sm:$0xff] }
  0x15   :  { %121 = vmatpush.msra.mxu1 %v80_v8  ;;  %v53_v26 = vld [vmem:[#allocation5 + $0x38] sm:$0xff]  ;;  %v52_v27 = vld [vmem:[#allocation5 + $0x30] sm:$0xff]  ;;  %v50_v28 = vld [vmem:[#allocation5 + $0x20] sm:$0xff] }
  0x16   :  { %98 = vmatpush.msra.mxu0 %v79_v9  ;;  %v49_v29 = vld [vmem:[#allocation5 + $0x18] sm:$0xff]  ;;  %v47_v30 = vld [vmem:[#allocation5 + $0x8] sm:$0xff]  ;;  %v46_v31 = vld [vmem:[#allocation5] sm:$0xff] }
  0x17   :  { %122 = vmatpush.msra.mxu1 %v77_v10  ;;  %v44_v32 = vld [vmem:[#allocation2] sm:$0xff]  ;;  %v45_v33 = vld [vmem:[#allocation2 + $0x8] sm:$0xff]  ;;  %v90_v39 = vld [vmem:[#allocation5 + $0x160] sm:$0xff] }
  0x18   :  { %99 = vmatpush.msra.mxu0 %v76_v11  ;;  %v93_v38 = vld [vmem:[#allocation5 + $0x178] sm:$0xff]  ;;  %v87_v40 = vld [vmem:[#allocation5 + $0x148] sm:$0xff]  ;;  %v84_v41 = vld [vmem:[#allocation5 + $0x130] sm:$0xff] }
  0x19   :  { %123 = vmatpush.msra.mxu1 %v74_v12  ;;  %140 = vmatpush.msra.mxu2 %v93_v38  ;;  %v81_v42 = vld [vmem:[#allocation5 + $0x118] sm:$0xff]  ;;  %v78_v43 = vld [vmem:[#allocation5 + $0x100] sm:$0xff]  ;;  %v75_v44 = vld [vmem:[#allocation5 + $0xe8] sm:$0xff] }
  0x1a   :  { %100 = vmatpush.msra.mxu0 %v73_v13  ;;  %v72_v46 = vld [vmem:[#allocation5 + $0xd0] sm:$0xff]  ;;  %v69_v47 = vld [vmem:[#allocation5 + $0xb8] sm:$0xff]  ;;  %v66_v50 = vld [vmem:[#allocation5 + $0xa0] sm:$0xff] }
  0x1b   :  { %124 = vmatpush.msra.mxu1 %v71_v14  ;;  %141 = vmatpush.msra.mxu2 %v90_v39  ;;  %v63_v59 = vld [vmem:[#allocation5 + $0x88] sm:$0xff]  ;;  %v60_v60 = vld [vmem:[#allocation5 + $0x70] sm:$0xff]  ;;  %v57_v61 = vld [vmem:[#allocation5 + $0x58] sm:$0xff]  ;;  %v526_v39 = vmov 1983009808  }
  0x1c   :  { %101 = vmatpush.msra.mxu0 %v70_v15  ;;  %v54_v62 = vld [vmem:[#allocation5 + $0x40] sm:$0xff]  ;;  %v51_v63 = vld [vmem:[#allocation5 + $0x28] sm:$0xff]  ;;  %v48_v0 = vld [vmem:[#allocation5 + $0x10] sm:$0xff] }
  0x1d   :  { %125 = vmatpush.msra.mxu1 %v68_v16  ;;  %142 = vmatpush.msra.mxu2 %v87_v40  ;;  %v313_v40 = vunpack.c.l.s4 %v526_v39 }
  0x1e   :  { %102 = vmatpush.msra.mxu0 %v67_v17 }
  0x1f   :  { %126 = vmatpush.msra.mxu1 %v65_v18  ;;  %143 = vmatpush.msra.mxu2 %v84_v41 }
  0x20   :  { %103 = vmatpush.msra.mxu0 %v64_v19 }
  0x21   :  { %127 = vmatpush.msra.mxu1 %v62_v20  ;;  %144 = vmatpush.msra.mxu2 %v81_v42  ;;  %v314_v42 = vunpack.c.0.s8 %v313_v40 }
  0x22   :  { %104 = vmatpush.msra.mxu0 %v61_v21 }
  0x23   :  { %128 = vmatpush.msra.mxu1 %v59_v22  ;;  %145 = vmatpush.msra.mxu2 %v78_v43 }
  0x24   :  { %105 = vmatpush.msra.mxu0 %v58_v23 }
  0x25   :  { %129 = vmatpush.msra.mxu1 %v56_v24  ;;  %146 = vmatpush.msra.mxu2 %v75_v44 }
  0x26   :  { %106 = vmatpush.msra.mxu0 %v55_v25 }
  0x27   :  { %130 = vmatpush.msra.mxu1 %v53_v26  ;;  %147 = vmatpush.msra.mxu2 %v72_v46  ;;  %v335_v46 = vunpack.c.l.s4 %v527_v45 }
  0x28   :  { %107 = vmatpush.msra.mxu0 %v52_v27 }
  0x29   :  { %131 = vmatpush.msra.mxu1 %v50_v28  ;;  %148 = vmatpush.msra.mxu2 %v69_v47 }
  0x2a   :  { %108 = vmatpush.msra.mxu0 %v49_v29 }
  0x2b   :  { %132 = vmatpush.msra.mxu1 %v47_v30  ;;  %149 = vmatpush.msra.mxu2 %v66_v50 }
  0x2c   :  { %109 = vmatpush.msra.mxu0 %v46_v31  ;;  %133 = vmatmul.f32.vlgmr.msra.gmra.mxu1 %v44_v32 }
  0x2d   :  { %110 = vmatmul.f32.vlgmr.msra.gmra.mxu0 %v44_v32  ;;  %150 = vmatpush.msra.mxu2 %v63_v59 }
  0x2f   :  { %151 = vmatpush.msra.mxu2 %v60_v60 }
  0x31   :  { %152 = vmatpush.msra.mxu2 %v57_v61 }
  0x33   :  { %153 = vmatpush.msra.mxu2 %v54_v62 }
  0x34   :  { %136 = vmatmul.f32.gmra.mxu1 %v45_v33 }
  0x35   :  { %113 = vmatmul.f32.gmra.mxu0 %v45_v33  ;;  %154 = vmatpush.msra.mxu2 %v51_v63 }
  0x37   :  { %155 = vmatpush.msra.mxu2 %v48_v0 }
  0x38   :  { %156 = vmatmul.f32.vlgmr.msra.gmra.mxu2 %v44_v32 }
  0x40   :  { %159 = vmatmul.f32.gmra.mxu2 %v45_v33 }
  0xa9   :  { %v134_v34 = vpop.f32.mrf.mxu1 }
  0xaa   :  { %v111_v35 = vpop.f32.mrf.mxu0  ;;  %178 = vmatpush.xpose.msra.mxu3 %v134_v34 }
  0xad   :  { %179 = vmatmul.f32.vlgmr.msra.gmra.mxu3 %v111_v35 }
  0xb1   :  { %v137_v36 = vpop.f32.mrf.mxu1 }
  0xb2   :  { %198 = vmatpush.xpose.msrb.mxu3 %v137_v36  ;;  %v114_v37 = vpop.f32.mrf.mxu0 }
  0xb5   :  { %199 = vmatmul.f32.vlgmr.msrb.gmra.mxu3 %v114_v37 }
  0xbb   :  { %v157_v11 = vpop.f32.mrf.mxu2 }
  0xbc   :  { %281 = vmatpush.msra.mxu3 %v157_v11 }
  0xc3   :  { %v160_v12 = vpop.f32.mrf.mxu2 }
  0xc4   :  { %304 = vmatpush.msrb.mxu3 %v160_v12 }
 0x130   :  { %v180_v51 = vpop.f32.mrf.mxu3 }
 0x131   :  { %v203_v52 = vmul.f32 0.089087084, %v180_v51 }
 0x133   :  { %v212_v53 = vsel %vm209_vm0, %v203_v52, -inf }
 0x134   :  { %v215_v54 = vsel %vm214_vm1, %v212_v53, -inf }
 0x135   :  { %216 = vmax.xlane.f32.xlu0 %v215_v54  ;;  %v336_v54 = vunpack.c.0.s8 %v335_v46 }
 0x138   :  { %v200_v55 = vpop.f32.mrf.mxu3 }
 0x139   :  { %v204_v56 = vmul.f32 0.089087084, %v200_v55 }
 0x13b   :  { %v213_v57 = vsel %vm209_vm0, %v204_v56, -inf }
 0x13c   :  { %v218_v58 = vsel %vm214_vm1, %v213_v57, -inf }
 0x13d   :  { %219 = vmax.xlane.f32.xlu0 %v218_v58 }
 0x1a8   :  { %v217_v1 = vpop.xlane.xlu0 %216 }
 0x1a9   :  { %v221_v2 = vsub.f32 %v212_v53, %v217_v1 }
 0x1ab   :  { %v223_v3 = vmul.f32 1.442695, %v221_v2 }
 0x1ad   :  { %434 = vpow2.f32 %v223_v3 }
 0x1b0   :  { %v220_v4 = vpop.xlane.xlu0 %219 }
 0x1b1   :  { %v222_v5 = vsub.f32 %v213_v57, %v220_v4 }
 0x1b3   :  { %v435_v6 = vpop.eup %434  ;;  %v225_v7 = vmul.f32 1.442695, %v222_v5 }
 0x1b4   :  { %v227_v8 = vsel %vm214_vm1, %v435_v6, 0.0 }
 0x1b5   :  { %436 = vpow2.f32 %v225_v7  ;;  %228 = vadd.xlane.f32.xlu1 %v227_v8 }
 0x1bb   :  { %v437_v9 = vpop.eup %436 }
 0x1bc   :  { %v230_v10 = vsel %vm214_vm1, %v437_v9, 0.0 }
 0x1bd   :  { %231 = vadd.xlane.f32.xlu1 %v230_v10 }
 0x228   :  { %v229_v13 = vpop.xlane.xlu1 %228 }
 0x229   :  { %438 = vrcp.f32 %v229_v13  ;;  %v244_v18 = vand.u32 2147483648, %v229_v13  ;;  %v242_v20 = vand.u32 2147483647, %v229_v13  ;;  %vm238_vm3 = vweird.f32 %v229_v13 }
 0x22b   :  { %v245_v23 = vor.u32 1.1754944e-38, %v244_v18  ;;  %vm243_vm5 = vcmp.eq.f32.partialorder %v242_v20, 8.507059e+37 }
 0x22f   :  { %v439_v14 = vpop.eup %438 }
 0x230   :  { %v234_v15 = vmul.f32 %v439_v14, %v229_v13  ;;  %v232_v16 = vpop.xlane.xlu1 %231  ;;  %vm239_vm2 = vweird.f32 %v439_v14 }
 0x231   :  { %440 = vrcp.f32 %v232_v16  ;;  %vm240_vm4 = vmor %vm238_vm3, %vm239_vm2  ;;  %v259_v29 = vand.u32 2147483648, %v232_v16  ;;  %v257_v31 = vand.u32 2147483647, %v232_v16  ;;  %vm253_vm7 = vweird.f32 %v232_v16 }
 0x232   :  { %v235_v17 = vsub.f32 1.0, %v234_v15 }
 0x233   :  { %v260_v33 = vor.u32 1.1754944e-38, %v259_v29  ;;  %vm258_vm9 = vcmp.eq.f32.partialorder %v257_v31, 8.507059e+37 }
 0x234   :  { %v236_v19 = vmul.f32 %v439_v14, %v235_v17 }
 0x236   :  { %v237_v21 = vadd.f32 %v439_v14, %v236_v19 }
 0x237   :  { %v441_v22 = vpop.eup %440 }
 0x238   :  { %v241_v24 = vsel %vm240_vm4, %v439_v14, %v237_v21  ;;  %v249_v25 = vmul.f32 %v441_v22, %v232_v16  ;;  %vm254_vm6 = vweird.f32 %v441_v22 }
 0x239   :  { %v246_v26 = vsel %vm243_vm5, %v245_v23, %v241_v24  ;;  %vm255_vm8 = vmor %vm253_vm7, %vm254_vm6 }
 0x23a   :  { %v250_v27 = vsub.f32 1.0, %v249_v25  ;;  %v247_v28 = vmul.f32 %v435_v6, %v246_v26 }
 0x23c   :  { %v251_v30 = vmul.f32 %v441_v22, %v250_v27  ;;  %420 = vmatmul.msk.f32.vlgmr.msra.gmra.mxu3 %vm214_vm1, %v247_v28 }
 0x23e   :  { %v252_v32 = vadd.f32 %v441_v22, %v251_v30 }
 0x240   :  { %v256_v34 = vsel %vm255_vm8, %v441_v22, %v252_v32 }
 0x241   :  { %v261_v35 = vsel %vm258_vm9, %v260_v33, %v256_v34 }
 0x242   :  { %v262_v36 = vmul.f32 %v437_v9, %v261_v35 }
 0x244   :  { %421 = vmatmul.msk.f32.vlgmr.msrb.gmra.mxu3 %vm214_vm1, %v262_v36 }
 0x2bf   :  { %v283_v37 = vpop.f32.mrf.mxu3 }
 0x2c0   :  { %v309_v38 = vrot.slane %v283_v37, 4  ;;  %v315_v49 = vperm.slane %v283_v37, %v314_v42 }
 0x2c2   :  { %v311_v41 = vsel %vm310_vm10, 0.0, %v309_v38  ;;  %v332_v62 = vrot.slane %v315_v49, 4 }
 0x2c3   :  { %v319_v43 = vperm.slane %v311_v41, %v314_v42 }
 0x2c5   :  { %v344_v52 = vrot.slane %v319_v43, 4 }
 0x2c7   :  { %v306_v44 = vpop.f32.mrf.mxu3 }
 0x2c8   :  { %v320_v47 = vrot.slane %v306_v44, 4  ;;  %v325_v48 = vperm.slane %v306_v44, %v314_v42 }
 0x2ca   :  { %v321_v50 = vsel %vm310_vm10, 0.0, %v320_v47  ;;  %v330_v51 = vrot.slane %v325_v48, 4  ;;  %v333_v1 = vsel %vm310_vm10, %v325_v48, %v332_v62 }
 0x2cb   :  { %v329_v53 = vperm.slane %v321_v50, %v314_v42  ;;  %v341_v3 = vperm.slane %v333_v1, %v336_v54 }
 0x2cc   :  { %v331_v55 = vsel %vm310_vm10, %v330_v51, %v315_v49 }
 0x2cd   :  { %v345_v56 = vsel %vm310_vm10, %v329_v53, %v344_v52  ;;  %v337_v57 = vperm.slane %v331_v55, %v336_v54  ;;  %v342_v60 = vrot.slane %v329_v53, 4  ;;  %v356_v7 = vrot.slane %v341_v3, 4 }
 0x2ce   :  { %v353_v58 = vperm.slane %v345_v56, %v336_v54 }
 0x2cf   :  { %v354_v59 = vrot.slane %v337_v57, 4  ;;  %v343_v2 = vsel %vm310_vm10, %v342_v60, %v319_v43  ;;  %v357_v8 = vsel %vm310_vm10, 0.0, %v356_v7 }
 0x2d0   :  { %379 = vrot.lane.b32.xlu2 %v353_v58, %s528_s0  ;;  %v360_v61 = vrot.slane %v353_v58, 4  ;;  %v349_v4 = vperm.slane %v343_v2, %v336_v54 }
 0x2d1   :  { %v355_v63 = vsel %vm310_vm10, 0.0, %v354_v59 }
 0x2d2   :  { %363 = vrot.lane.b32.xlu0 %v355_v63, %s529_s1  ;;  %v361_v0 = vsel %vm310_vm10, 0.0, %v360_v61  ;;  %v358_v5 = vrot.slane %v349_v4, 4 }
 0x2d3   :  { %383 = vrot.lane.b32.xlu1 %v361_v0, %s530_s23 }
 0x2d4   :  { %v359_v6 = vsel %vm310_vm10, 0.0, %v358_v5 }
 0x2d8   :  { %367 = vrot.lane.b32.xlu2 %v341_v3, %s528_s0 }
 0x2e0   :  { %375 = vrot.lane.b32.xlu2 %v359_v6, %s529_s1 }
 0x2e8   :  { %371 = vrot.lane.b32.xlu2 %v357_v8, %s530_s23 }
 0x32a   :  { %v380_v9 = vpop.permute.xlu2 %379 }
 0x332   :  { %v368_v10 = vpop.permute.xlu2 %367 }
 0x33a   :  { %v376_v11 = vpop.permute.xlu2 %375 }
 0x33b   :  { %v392_v12 = vsel %vm386_vm11, %v349_v4, %v376_v11 }
 0x33c   :  { %v393_v16 = vsel %vm388_vm12, %v392_v12, %v380_v9 }
 0x342   :  { %v372_v17 = vpop.permute.xlu2 %371 }
 0x344   :  { %v364_v13 = vpop.permute.xlu0 %363 }
 0x345   :  { %v387_v14 = vsel %vm386_vm11, %v337_v57, %v364_v13  ;;  %v384_v15 = vpop.permute.xlu1 %383 }
 0x346   :  { %v389_v18 = vsel %vm388_vm12, %v387_v14, %v368_v10  ;;  %v394_v19 = vsel %vm390_vm13, %v393_v16, %v384_v15 }
 0x347   :  { %v391_v20 = vsel %vm390_vm13, %v389_v18, %v372_v17  ;;  %v397_v21 = vrot.slane %v394_v19, 6 }
 0x349   :  { %v399_v22 = vsel %vm398_vm14, %v391_v20, %v397_v21 }
 0x34a   :  { %401 = vst [vmem:[#allocation7] sm:$0xf] %v399_v22 }
 0x34b   :  { %412 = dma.vmem_to_hbm [thread:$0]  %s408_s25, 64, %s410_s28, [#allocation4]  }
 0x34c   :  { %518 = dma.done.wait [#allocation4], 64  }
 0x34d   :  { %519 = vsyncadd [#allocation4], 4294967232 }
 0x34e   :  { %417 = vsyncpa [#allocation3], 1 }
 0x34f   :  { %418 = vsyncpa [#allocation6], 1 }
 0x350   :  { %419 = vsyncpa [#allocation4], 1 }

</bundles_post_ra>
